<compile_context>
chip_gen: v6e
topology: v6e:2x2x1
jax: 0.10.0
libtpu: 0.0.40
codegen_flags: <defaults>
</compile_context>

<pallas_src>
import functools
import math

import jax
import jax.numpy as jnp
from jax import lax
from jax.experimental import pallas as pl
from jax.experimental.pallas import tpu as pltpu

_SQRT_HALF = 1.0 / math.sqrt(2.0)


def _round_up(x, m):
    return (x + m - 1) // m * m


def _head_transform_kernel(x_ref, w_ref, b_ref, g_ref, beta_ref, o_ref, *,
                           eps, feat_valid):
    # Dense: y = x @ W^T, W kept in PyTorch (out, in) layout -> contract last dims.
    y = lax.dot_general(
        x_ref[...], w_ref[...],
        dimension_numbers=(((1,), (1,)), ((), ())),
        preferred_element_type=jnp.float32,
    )
    y = y + b_ref[...]  # (tm, Ep) + (1, Ep), f32

    # GELU (exact, erf-based) - matches torch.nn.functional.gelu / ACT2FN["gelu"].
    y = 0.5 * y * (1.0 + lax.erf(y * _SQRT_HALF))

    e_pad = y.shape[-1]
    padded = e_pad != feat_valid
    if padded:
        # Feature axis was zero-padded up to a multiple of 128: exclude the
        # padded lanes from the LayerNorm statistics.
        lane = lax.broadcasted_iota(jnp.int32, (1, e_pad), 1)
        valid = lane < feat_valid
        y = jnp.where(valid, y, 0.0)

    inv_n = 1.0 / float(feat_valid)
    mean = jnp.sum(y, axis=-1, keepdims=True) * inv_n
    centered = y - mean
    if padded:
        centered = jnp.where(valid, centered, 0.0)
    var = jnp.sum(centered * centered, axis=-1, keepdims=True) * inv_n
    out = centered * lax.rsqrt(var + eps) * g_ref[...] + beta_ref[...]

    o_ref[...] = out.astype(o_ref.dtype)


def bert_prediction_head_transform(x, weight, bias, gamma, beta, *,
                                   eps=1e-12, block_rows=512):
    """x: (B, S, H). weight: (E, H) (PyTorch nn.Linear layout). Returns (B, S, E)."""
    B, S, H = x.shape
    E, H_w = weight.shape
    assert H_w == H, (weight.shape, H)
    M = B * S

    # Lane-dense padding of feature axes (no-op when H, E are multiples of 128).
    Hp = _round_up(H, 128)
    Ep = _round_up(E, 128)

    x2d = x.reshape(M, H)
    if Hp != H:
        x2d = jnp.pad(x2d, ((0, 0), (0, Hp - H)))
    w = weight
    if Hp != H or Ep != E:
        w = jnp.pad(w, ((0, Ep - E), (0, Hp - H)))
    b2d = jnp.pad(bias, (0, Ep - E)).reshape(1, Ep)
    g2d = jnp.pad(gamma, (0, Ep - E)).reshape(1, Ep)
    be2d = jnp.pad(beta, (0, Ep - E)).reshape(1, Ep)

    # Row tile: full-M block for small inputs, otherwise a 512-row (8/128/256
    # aligned) tile so that resident weight + double-buffered in/out tiles stay
    # well inside every generation's scoped-VMEM default (incl. v5e 16 MiB,
    # v7x 64 MiB physical) while keeping the MXU full.
    tm = M if M <= block_rows else block_rows
    grid = (pl.cdiv(M, tm),)

    kernel = functools.partial(_head_transform_kernel, eps=eps, feat_valid=E)

    cost = pl.CostEstimate(
        flops=2 * M * H * E,
        transcendentals=M * E,  # erf
        bytes_accessed=4 * (M * H + E * H + M * E + 3 * E),
    )

    out2d = pl.pallas_call(
        kernel,
        out_shape=jax.ShapeDtypeStruct((M, Ep), x.dtype),
        grid_spec=pltpu.PrefetchScalarGridSpec(
            num_scalar_prefetch=0,
            grid=grid,
            in_specs=[
                pl.BlockSpec((tm, Hp), lambda i: (i, 0)),  # activations: tiled rows
                pl.BlockSpec((Ep, Hp), lambda i: (0, 0)),  # weight: resident
                pl.BlockSpec((1, Ep), lambda i: (0, 0)),   # bias
                pl.BlockSpec((1, Ep), lambda i: (0, 0)),   # gamma
                pl.BlockSpec((1, Ep), lambda i: (0, 0)),   # beta
            ],
            out_specs=pl.BlockSpec((tm, Ep), lambda i: (i, 0)),
        ),
        compiler_params=pltpu.CompilerParams(
            # Row tiles are independent (K is not tiled, LayerNorm is per-row),
            # so the grid axis is parallel -> megacore-shardable on v7x.
            dimension_semantics=("parallel",),
        ),
        cost_estimate=cost,
    )(x2d, w, b2d, g2d, be2d)

    if Ep != E:
        out2d = out2d[:, :E]
    return out2d.reshape(B, S, E)


def _reference(x, weight, bias, gamma, beta, eps=1e-12):
    y = jnp.einsum("bsh,eh->bse", x, weight) + bias
    y = 0.5 * y * (1.0 + lax.erf(y / jnp.sqrt(2.0)))
    mean = y.mean(-1, keepdims=True)
    var = ((y - mean) ** 2).mean(-1, keepdims=True)
    return (y - mean) / jnp.sqrt(var + eps) * gamma + beta


def _make_params(key, B, S, H, E, dtype=jnp.float32):
    kx, kw, kb, kg, kbeta = jax.random.split(key, 5)
    x = jax.random.normal(kx, (B, S, H), dtype=dtype)
    weight = jax.random.normal(kw, (E, H), dtype=dtype) * 0.02  # nn.Linear (out, in)
    bias = jax.random.normal(kb, (E,), dtype=dtype) * 0.02
    gamma = jnp.ones((E,), dtype=dtype) + 0.01 * jax.random.normal(kg, (E,), dtype=dtype)
    beta = 0.01 * jax.random.normal(kbeta, (E,), dtype=dtype)
    return x, weight, bias, gamma, beta


if __name__ == "__main__":
    eps = 1e-12
    key = jax.random.PRNGKey(0)
    k1, k2 = jax.random.split(key)

    # 1) Module-sized demo config: hidden_size=32, embedding_size=32 (padded lanes path).
    B, S, H, E = 2, 8, 32, 32
    x, weight, bias, gamma, beta = _make_params(k1, B, S, H, E)
    out = bert_prediction_head_transform(x, weight, bias, gamma, beta, eps=eps)
    out = jax.block_until_ready(out)
    ref = _reference(x, weight, bias, gamma, beta, eps=eps)
    assert out.shape == (B, S, E), out.shape
    assert jnp.allclose(out, ref, atol=1e-4, rtol=1e-4), "mismatch vs reference (small)"

    # 2) Lane-dense, multi-tile config exercising the pipelined row grid (grid=3).
    B2, S2, H2, E2 = 2, 768, 128, 128
    x2, w2, b2, g2, be2 = _make_params(k2, B2, S2, H2, E2)
    out2 = bert_prediction_head_transform(x2, w2, b2, g2, be2, eps=eps)
    out2 = jax.block_until_ready(out2)
    ref2 = _reference(x2, w2, b2, g2, be2, eps=eps)
    assert out2.shape == (B2, S2, E2), out2.shape
    assert jnp.allclose(out2, ref2, atol=1e-4, rtol=1e-4), "mismatch vs reference (tiled)"

    print("KERNEL_OK")
</pallas_src>

<mosaic_0001>
module attributes {stable_mosaic.version = 11 : i64} {
  func.func @_head_transform_kernel(%arg0: i32, %arg1: memref<16x128xf32, #tpu.memory_space<vmem>>, %arg2: memref<128x128xf32, #tpu.memory_space<vmem>>, %arg3: memref<1x128xf32, #tpu.memory_space<vmem>>, %arg4: memref<1x128xf32, #tpu.memory_space<vmem>>, %arg5: memref<1x128xf32, #tpu.memory_space<vmem>>, %arg6: memref<16x128xf32, #tpu.memory_space<vmem>>) attributes {dimension_semantics = [#tpu.dimension_semantics<parallel>], iteration_bounds = array<i64: 1>, scalar_prefetch = 0 : i64, scratch_operands = 0 : i64, tpu.core_type = #tpu.core_type<tc>, window_params = [{transform_indices = @transform_0, window_bounds = array<i64: 16, 128>}, {pipeline_mode = #tpu.pipeline_mode<synchronous>, transform_indices = @transform_1, window_bounds = array<i64: 128, 128>}, {pipeline_mode = #tpu.pipeline_mode<synchronous>, transform_indices = @transform_2, window_bounds = array<i64: 1, 128>}, {pipeline_mode = #tpu.pipeline_mode<synchronous>, transform_indices = @transform_3, window_bounds = array<i64: 1, 128>}, {pipeline_mode = #tpu.pipeline_mode<synchronous>, transform_indices = @transform_4, window_bounds = array<i64: 1, 128>}, {transform_indices = @transform_5, window_bounds = array<i64: 16, 128>}]} {
    %c0 = arith.constant 0 : index
    %c0_0 = arith.constant 0 : index
    %0 = vector.load %arg1[%c0, %c0_0] : memref<16x128xf32, #tpu.memory_space<vmem>>, vector<16x128xf32>
    %c0_1 = arith.constant 0 : index
    %c0_2 = arith.constant 0 : index
    %1 = vector.load %arg2[%c0_1, %c0_2] : memref<128x128xf32, #tpu.memory_space<vmem>>, vector<128x128xf32>
    %cst = arith.constant dense<0.000000e+00> : vector<16x128xf32>
    %2 = tpu.matmul %0, %1, %cst {dimension_numbers = #tpu.dot_dimension_numbers<[1], [1], [0], [0], [0, 0, 1, 0], [], []>} : vector<16x128xf32>, vector<128x128xf32>, vector<16x128xf32> -> vector<16x128xf32>
    %c0_3 = arith.constant 0 : index
    %c0_4 = arith.constant 0 : index
    %3 = vector.load %arg3[%c0_3, %c0_4] : memref<1x128xf32, #tpu.memory_space<vmem>>, vector<1x128xf32>
    %4 = vector.broadcast %3 : vector<1x128xf32> to vector<16x128xf32>
    %5 = arith.addf %2, %4 : vector<16x128xf32>
    %cst_5 = arith.constant 5.000000e-01 : f32
    %6 = vector.broadcast %cst_5 : f32 to vector<16x128xf32>
    %7 = arith.mulf %6, %5 : vector<16x128xf32>
    %cst_6 = arith.constant 0.707106769 : f32
    %8 = vector.broadcast %cst_6 : f32 to vector<16x128xf32>
    %9 = arith.mulf %5, %8 : vector<16x128xf32>
    %10 = math.erf %9 : vector<16x128xf32>
    %cst_7 = arith.constant 1.000000e+00 : f32
    %11 = vector.broadcast %cst_7 : f32 to vector<16x128xf32>
    %12 = arith.addf %11, %10 : vector<16x128xf32>
    %13 = arith.mulf %7, %12 : vector<16x128xf32>
    %14 = tpu.iota {dimensions = array<i32: 1>} : vector<1x128xi32>
    %c32_i32 = arith.constant 32 : i32
    %15 = vector.broadcast %c32_i32 : i32 to vector<1x128xi32>
    %16 = arith.cmpi slt, %14, %15 : vector<1x128xi32>
    %cst_8 = arith.constant 0.000000e+00 : f32
    %17 = vector.shape_cast %16 : vector<1x128xi1> to vector<1x128xi1>
    %18 = vector.broadcast %17 : vector<1x128xi1> to vector<16x128xi1>
    %19 = vector.broadcast %cst_8 : f32 to vector<16x128xf32>
    %20 = arith.select %18, %13, %19 : vector<16x128xi1>, vector<16x128xf32>
    %cst_9 = arith.constant dense<0.000000e+00> : vector<16xf32>
    %21 = vector.multi_reduction <add>, %20, %cst_9 [1] : vector<16x128xf32> to vector<16xf32>
    %22 = vector.shape_cast %21 : vector<16xf32> to vector<16x1xf32>
    %cst_10 = arith.constant 3.125000e-02 : f32
    %23 = vector.broadcast %cst_10 : f32 to vector<16x1xf32>
    %24 = arith.mulf %22, %23 : vector<16x1xf32>
    %25 = vector.broadcast %24 : vector<16x1xf32> to vector<16x128xf32>
    %26 = arith.subf %20, %25 : vector<16x128xf32>
    %cst_11 = arith.constant 0.000000e+00 : f32
    %27 = vector.shape_cast %16 : vector<1x128xi1> to vector<1x128xi1>
    %28 = vector.broadcast %27 : vector<1x128xi1> to vector<16x128xi1>
    %29 = vector.broadcast %cst_11 : f32 to vector<16x128xf32>
    %30 = arith.select %28, %26, %29 : vector<16x128xi1>, vector<16x128xf32>
    %31 = arith.mulf %30, %30 : vector<16x128xf32>
    %cst_12 = arith.constant dense<0.000000e+00> : vector<16xf32>
    %32 = vector.multi_reduction <add>, %31, %cst_12 [1] : vector<16x128xf32> to vector<16xf32>
    %33 = vector.shape_cast %32 : vector<16xf32> to vector<16x1xf32>
    %cst_13 = arith.constant 3.125000e-02 : f32
    %34 = vector.broadcast %cst_13 : f32 to vector<16x1xf32>
    %35 = arith.mulf %33, %34 : vector<16x1xf32>
    %cst_14 = arith.constant 9.99999996E-13 : f32
    %36 = vector.broadcast %cst_14 : f32 to vector<16x1xf32>
    %37 = arith.addf %35, %36 : vector<16x1xf32>
    %38 = math.rsqrt %37 : vector<16x1xf32>
    %39 = vector.broadcast %38 : vector<16x1xf32> to vector<16x128xf32>
    %40 = arith.mulf %30, %39 : vector<16x128xf32>
    %c0_15 = arith.constant 0 : index
    %c0_16 = arith.constant 0 : index
    %41 = vector.load %arg4[%c0_15, %c0_16] : memref<1x128xf32, #tpu.memory_space<vmem>>, vector<1x128xf32>
    %42 = vector.broadcast %41 : vector<1x128xf32> to vector<16x128xf32>
    %43 = arith.mulf %40, %42 : vector<16x128xf32>
    %c0_17 = arith.constant 0 : index
    %c0_18 = arith.constant 0 : index
    %44 = vector.load %arg5[%c0_17, %c0_18] : memref<1x128xf32, #tpu.memory_space<vmem>>, vector<1x128xf32>
    %45 = vector.broadcast %44 : vector<1x128xf32> to vector<16x128xf32>
    %46 = arith.addf %43, %45 : vector<16x128xf32>
    %c0_19 = arith.constant 0 : index
    %c0_20 = arith.constant 0 : index
    %47 = vector.load %arg6[%c0_19, %c0_20] : memref<16x128xf32, #tpu.memory_space<vmem>>, vector<16x128xf32>
    tpu.vector_store %arg6[%c0_19, %c0_20], %46 {strides = array<i32>} : memref<16x128xf32, #tpu.memory_space<vmem>>, vector<16x128xf32>,
    return
  }
  func.func @transform_0(%arg0: i32) -> (i32, i32) {
    %c0_i32 = arith.constant 0 : i32
    %c0_i32_0 = arith.constant 0 : i32
    return %arg0, %c0_i32 : i32, i32
  }
  func.func @transform_1(%arg0: i32) -> (i32, i32) {
    %c0_i32 = arith.constant 0 : i32
    %c0_i32_0 = arith.constant 0 : i32
    %c0_i32_1 = arith.constant 0 : i32
    return %c0_i32, %c0_i32_0 : i32, i32
  }
  func.func @transform_2(%arg0: i32) -> (i32, i32) {
    %c0_i32 = arith.constant 0 : i32
    %c0_i32_0 = arith.constant 0 : i32
    %c0_i32_1 = arith.constant 0 : i32
    return %c0_i32, %c0_i32_0 : i32, i32
  }
  func.func @transform_3(%arg0: i32) -> (i32, i32) {
    %c0_i32 = arith.constant 0 : i32
    %c0_i32_0 = arith.constant 0 : i32
    %c0_i32_1 = arith.constant 0 : i32
    return %c0_i32, %c0_i32_0 : i32, i32
  }
  func.func @transform_4(%arg0: i32) -> (i32, i32) {
    %c0_i32 = arith.constant 0 : i32
    %c0_i32_0 = arith.constant 0 : i32
    %c0_i32_1 = arith.constant 0 : i32
    return %c0_i32, %c0_i32_0 : i32, i32
  }
  func.func @transform_5(%arg0: i32) -> (i32, i32) {
    %c0_i32 = arith.constant 0 : i32
    %c0_i32_0 = arith.constant 0 : i32
    return %arg0, %c0_i32 : i32, i32
  }
}

</mosaic_0001>

<bundles_post_ra>
// kernel: tpu_custom_call.1
= control target key start
LH: loop header
LB: loop body
LE: loop exit
PB: predicated region body
PF: predicated region fallthrough
CT: control target
= control target key end

     0   :  { %10 = vsyncpa [#allocation3], 0  ;;  %s425_s0 = inlined_call_operand.hbm [shape: f32[16,128], index: 0, kind: input, shape index: {}]   ;;  %s426_s1 = inlined_call_operand.hbm [shape: f32[128,128], index: 1, kind: input, shape index: {}]   ;;  %s427_s2 = inlined_call_operand.vmem [shape: f32[1,128], index: 2, kind: input, shape index: {}]   ;;  %s428_s3 = inlined_call_operand.vmem [shape: f32[1,128], index: 3, kind: input, shape index: {}]   ;;  %s429_s4 = inlined_call_operand.vmem [shape: f32[1,128], index: 4, kind: input, shape index: {}]   ;;  %s430_s5 = inlined_call_operand.hbm [shape: f32[16,128], index: 5, kind: output, shape index: {}]  }
   0x1   :  { %11 = vsyncpa [#allocation6], 0 }
   0x2   :  { %12 = vsyncpa [#allocation4], 0  ;;  %s363_s18 = smov [#allocation2]  }
   0x3   :  { %s18_s19 = sshll.u32 %s363_s18, 4  ;;  %s19_s19 = int_to_ptr.vmem [resolvable:$true] %s18_s19 }
   0x4   :  { %s305_s20 = scalar_lea.vmem %s19_s19, 256  ;;  %p310_p1 = scmp.lt.s32.totalorder %s19_s19, %s19_s19 }
   0x5   :  { %p306_p0 = scmp.ne.s32.totalorder %s19_s19, %s305_s20  ;;  %p311_p2 = scmp.lt.s32.totalorder %s305_s20, %s305_s20 }
   0x7   :  { %p312_p3 = por %p311_p2, %p310_p1 }
   0x9   :  { %p313_p4 = pnand %p312_p3, %p306_p0 }
   0xb   :  { %316 = shalt.err (!%p313_p4)
}
   0xc   :  { %s364_s21 = smov 128   ;;  %s365_s22 = smov 8  }
   0xd   :  { %24 = dma.hbm_to_vmem [thread:$0]  %s425_s0, 256, %s19_s19, [#allocation3], %s364_s21, %s364_s21, %s365_s22  }
   0xe   :  { %s366_s25 = smov [#allocation5]  }
   0xf   :  { %s30_s26 = sshll.u32 %s366_s25, 4  ;;  %s31_s26 = int_to_ptr.vmem [resolvable:$true] %s30_s26 }
  0x10   :  { %s325_s27 = scalar_lea.vmem %s31_s26, 2048  ;;  %p330_p6 = scmp.lt.s32.totalorder %s31_s26, %s31_s26 }
  0x11   :  { %p326_p5 = scmp.ne.s32.totalorder %s31_s26, %s325_s27  ;;  %p331_p7 = scmp.lt.s32.totalorder %s325_s27, %s325_s27 }
  0x13   :  { %p332_p8 = por %p331_p7, %p330_p6 }
  0x15   :  { %p333_p9 = pnand %p332_p8, %p326_p5 }
  0x17   :  { %336 = shalt.err (!%p333_p9)
}
  0x18   :  { %36 = dma.hbm_to_vmem [thread:$0]  %s426_s1, 2048, %s31_s26, [#allocation6], %s364_s21, %s364_s21, %s365_s22  }
  0x19   :  { %357 = dma.done.wait [#allocation3], 256  }
  0x1a   :  { %358 = vsyncadd [#allocation3], 4294967040 }
  0x1b   :  { %359 = dma.done.wait [#allocation6], 2048  }
  0x1c   :  { %360 = vsyncadd [#allocation6], 4294965248  ;;  %v66_v0 = vld [vmem:[#allocation5 + $0x78] sm:$0xff]  ;;  %v65_v1 = vld [vmem:[#allocation5 + $0x70] sm:$0xff]  ;;  %v159_v25 = vlaneseq  ;;  %s367_s8 = smov [#allocation7]  }
  0x1d   :  { %249 = vmatprep.subr.mxu0 %v66_v0  ;;  %v64_v2 = vld [vmem:[#allocation5 + $0x68] sm:$0xff]  ;;  %v49_v3 = vld [vmem:[#allocation2] sm:$0xff]  ;;  %v63_v4 = vld [vmem:[#allocation5 + $0x60] sm:$0xff]  ;;  %s215_s9 = sshll.u32 %s367_s8, 4  ;;  %s216_s9 = int_to_ptr.vmem [resolvable:$true] %s215_s9 }
  0x1e   :  { %250 = vmatpush3.xpose.msra.mxu0 %v66_v0  ;;  %281 = vmatprep.mubr.f32.mxu0 %v49_v3  ;;  %v62_v5 = vld [vmem:[#allocation5 + $0x58] sm:$0xff]  ;;  %v61_v6 = vld [vmem:[#allocation5 + $0x50] sm:$0xff]  ;;  %v60_v7 = vld [vmem:[#allocation5 + $0x48] sm:$0xff]  ;;  %v160_v28 = vand.u32 127, %v159_v25  ;;  %s337_s10 = scalar_lea.vmem %s216_s9, 256  ;;  %p342_p11 = scmp.lt.s32.totalorder %s216_s9, %s216_s9 }
  0x1f   :  { %251 = vmatprep.subr.mxu0 %v65_v1  ;;  %v59_v8 = vld [vmem:[#allocation5 + $0x40] sm:$0xff]  ;;  %v58_v9 = vld [vmem:[#allocation5 + $0x38] sm:$0xff]  ;;  %v57_v10 = vld [vmem:[#allocation5 + $0x30] sm:$0xff]  ;;  %p338_p10 = scmp.ne.s32.totalorder %s216_s9, %s337_s10  ;;  %p343_p12 = scmp.lt.s32.totalorder %s337_s10, %s337_s10 }
  0x20   :  { %v56_v11 = vld [vmem:[#allocation5 + $0x28] sm:$0xff]  ;;  %v55_v12 = vld [vmem:[#allocation5 + $0x20] sm:$0xff]  ;;  %v54_v13 = vld [vmem:[#allocation5 + $0x18] sm:$0xff]  ;;  %vm161_vm0 = vcmp.lt.s32.totalorder %v160_v28, 32 }
  0x21   :  { %v53_v14 = vld [vmem:[#allocation5 + $0x10] sm:$0xff]  ;;  %v52_v15 = vld [vmem:[#allocation5 + $0x8] sm:$0xff]  ;;  %v51_v16 = vld [vmem:[#allocation5] sm:$0xff]  ;;  %p344_p13 = por %p343_p12, %p342_p11 }
  0x22   :  { %252 = vmatpush3.xpose.msra.mxu0 %v65_v1  ;;  %v50_v17 = vld [vmem:[#allocation2 + $0x8] sm:$0xff]  ;;  %v228_v18 = vld [vmem:[%s427_s2] ss:$0 sm:$0xff] }
  0x23   :  { %253 = vmatprep.subr.mxu0 %v64_v2  ;;  %v229_v54 = vld [vmem:[%s428_s3] ss:$0 sm:$0xff]  ;;  %p345_p0 = pnand %p344_p13, %p338_p10 }
  0x24   :  { %v230_v56 = vld [vmem:[%s429_s4] ss:$0 sm:$0xff] }
  0x26   :  { %254 = vmatpush3.xpose.msra.mxu0 %v64_v2 }
  0x27   :  { %255 = vmatprep.subr.mxu0 %v63_v4 }
  0x2a   :  { %256 = vmatpush3.xpose.msra.mxu0 %v63_v4 }
  0x2b   :  { %257 = vmatprep.subr.mxu0 %v62_v5 }
  0x2e   :  { %258 = vmatpush3.xpose.msra.mxu0 %v62_v5 }
  0x2f   :  { %259 = vmatprep.subr.mxu0 %v61_v6 }
  0x32   :  { %260 = vmatpush3.xpose.msra.mxu0 %v61_v6 }
  0x33   :  { %261 = vmatprep.subr.mxu0 %v60_v7 }
  0x36   :  { %262 = vmatpush3.xpose.msra.mxu0 %v60_v7 }
  0x37   :  { %263 = vmatprep.subr.mxu0 %v59_v8 }
  0x3a   :  { %264 = vmatpush3.xpose.msra.mxu0 %v59_v8 }
  0x3b   :  { %265 = vmatprep.subr.mxu0 %v58_v9 }
  0x3e   :  { %266 = vmatpush3.xpose.msra.mxu0 %v58_v9 }
  0x3f   :  { %267 = vmatprep.subr.mxu0 %v57_v10 }
  0x42   :  { %268 = vmatpush3.xpose.msra.mxu0 %v57_v10 }
  0x43   :  { %269 = vmatprep.subr.mxu0 %v56_v11 }
  0x46   :  { %270 = vmatpush3.xpose.msra.mxu0 %v56_v11 }
  0x47   :  { %271 = vmatprep.subr.mxu0 %v55_v12 }
  0x4a   :  { %272 = vmatpush3.xpose.msra.mxu0 %v55_v12 }
  0x4b   :  { %273 = vmatprep.subr.mxu0 %v54_v13 }
  0x4e   :  { %274 = vmatpush3.xpose.msra.mxu0 %v54_v13 }
  0x4f   :  { %275 = vmatprep.subr.mxu0 %v53_v14 }
  0x52   :  { %276 = vmatpush3.xpose.msra.mxu0 %v53_v14 }
  0x53   :  { %277 = vmatprep.subr.mxu0 %v52_v15 }
  0x56   :  { %278 = vmatpush3.xpose.msra.mxu0 %v52_v15 }
  0x57   :  { %279 = vmatprep.subr.mxu0 %v51_v16 }
  0x5a   :  { %280 = vmatpush3.xpose.msra.mxu0 %v51_v16 }
  0x5d   :  { %282 = vmatmul.mubr.f32.vlgmr.msra.gmra.mxu0 %v50_v17 }
 0x11d   :  { %v283_v19 = vpop.f32.mrf.mxu0 }
 0x11e   :  { %v146_v20 = vadd.f32 %v283_v19, %v228_v18 }
 0x11f   :  { %v140_v21 = vpop.f32.mrf.mxu0 }
 0x120   :  { %v152_v22 = vmul.f32 0.70710677, %v146_v20  ;;  %v141_v23 = vadd.f32 %v228_v18, %v140_v21  ;;  %v150_v32 = vmul.f32 0.5, %v146_v20 }
 0x122   :  { %289 = verf.f32 %v152_v22  ;;  %v151_v24 = vmul.f32 0.70710677, %v141_v23  ;;  %v149_v29 = vmul.f32 0.5, %v141_v23 }
 0x124   :  { %291 = verf.f32 %v151_v24 }
 0x12f   :  { %v290_v26 = vpop.eup %289 }
 0x130   :  { %v156_v31 = vadd.f32 1.0, %v290_v26 }
 0x131   :  { %v292_v27 = vpop.eup %291 }
 0x132   :  { %v155_v30 = vadd.f32 1.0, %v292_v27  ;;  %v158_v35 = vmul.f32 %v156_v31, %v150_v32 }
 0x134   :  { %v157_v33 = vmul.f32 %v155_v30, %v149_v29  ;;  %v165_v36 = vsel %vm161_vm0, %v158_v35, 0.0 }
 0x136   :  { %v164_v34 = vsel %vm161_vm0, %v157_v33, 0.0 }
 0x137   :  { %166 = vadd.xlane.f32.xlu0 %v164_v34 }
 0x13b   :  { %168 = vadd.xlane.f32.xlu0 %v165_v36 }
 0x1c0   :  { %v167_v37 = vpop.xlane.xlu0 %166 }
 0x1c1   :  { %v170_v38 = vmul.f32 0.03125, %v167_v37 }
 0x1c3   :  { %v172_v39 = vsub.f32 %v164_v34, %v170_v38 }
 0x1c4   :  { %v169_v40 = vpop.xlane.xlu0 %168 }
 0x1c5   :  { %v171_v41 = vmul.f32 0.03125, %v169_v40  ;;  %v174_v42 = vsel %vm161_vm0, %v172_v39, 0.0 }
 0x1c6   :  { %v176_v43 = vmul.f32 %v174_v42, %v174_v42 }
 0x1c7   :  { %v173_v44 = vsub.f32 %v165_v36, %v171_v41 }
 0x1c8   :  { %178 = vadd.xlane.f32.xlu1 %v176_v43 }
 0x1c9   :  { %v175_v45 = vsel %vm161_vm0, %v173_v44, 0.0 }
 0x1ca   :  { %v177_v46 = vmul.f32 %v175_v45, %v175_v45 }
 0x1cc   :  { %180 = vadd.xlane.f32.xlu1 %v177_v46 }
 0x251   :  { %v179_v47 = vpop.xlane.xlu1 %178 }
 0x252   :  { %v182_v48 = vmul.f32 0.03125, %v179_v47 }
 0x254   :  { %v184_v49 = vadd.f32 1e-12, %v182_v48 }
 0x255   :  { %v181_v50 = vpop.xlane.xlu1 %180 }
 0x256   :  { %293 = vrsqrt.f32 %v184_v49  ;;  %v183_v51 = vmul.f32 0.03125, %v181_v50 }
 0x258   :  { %v185_v52 = vadd.f32 1e-12, %v183_v51 }
 0x25a   :  { %295 = vrsqrt.f32 %v185_v52 }
 0x263   :  { %v294_v53 = vpop.eup %293 }
 0x264   :  { %v188_v55 = vmul.f32 %v294_v53, %v174_v42 }
 0x266   :  { %v197_v57 = vmul.f32 %v229_v54, %v188_v55 }
 0x267   :  { %v296_v58 = vpop.eup %295 }
 0x268   :  { %v189_v59 = vmul.f32 %v296_v58, %v175_v45  ;;  %v206_v60 = vadd.f32 %v230_v56, %v197_v57 }
 0x26a   :  { %v198_v61 = vmul.f32 %v229_v54, %v189_v59  ;;  %208 = vst [vmem:[#allocation7] sm:$0xff] %v206_v60 }
 0x26c   :  { %v207_v62 = vadd.f32 %v230_v56, %v198_v61 }
 0x26e   :  { %209 = vst [vmem:[#allocation7 + $0x8] sm:$0xff] %v207_v62 }
 0x26f   :  { %348 = shalt.err (!%p345_p0)
}
 0x270   :  { %221 = dma.vmem_to_hbm [thread:$0]  %s216_s9, 256, %s430_s5, [#allocation4], %s364_s21, %s364_s21, %s365_s22  }
 0x271   :  { %361 = dma.done.wait [#allocation4], 256  }
 0x272   :  { %362 = vsyncadd [#allocation4], 4294967040 }
 0x273   :  { %225 = vsyncpa [#allocation3], 1 }
 0x274   :  { %226 = vsyncpa [#allocation6], 1 }
 0x275   :  { %227 = vsyncpa [#allocation4], 1 }

</bundles_post_ra>
